<compile_context>
chip_gen: v7x
topology: tpu7x:2x2x1
jax: 0.10.0
libtpu: 0.0.40
codegen_flags: <defaults>
</compile_context>

<pallas_src>
import functools

import jax
import jax.numpy as jnp
from jax import lax
from jax.experimental import pallas as pl
from jax.experimental.pallas import tpu as pltpu


def _spatial_attention_kernel(w_ref, x_ref, o_ref, sum_ref, max_ref,
                              *, C, H, W, TC):
    """One grid step = one (batch, channel-chunk) pair.

    w_ref   : (18,) flattened conv weight (out=1, in=2, kh=3, kw=3), SMEM
    x_ref   : (1, TC, H*W) VMEM input tile (lane-dense spatial)
    o_ref   : (1, 1, H*W)  VMEM output tile
    sum_ref : (1, H*W) f32 running channel sum   (VMEM scratch)
    max_ref : (1, H*W) f32 running channel max   (VMEM scratch)
    """
    HW = H * W
    c_step = pl.program_id(1)

    # ---- init accumulators on the first channel chunk of this batch row ----
    @pl.when(c_step == 0)
    def _():
        sum_ref[...] = jnp.zeros_like(sum_ref)
        max_ref[...] = jnp.full_like(max_ref, -jnp.inf)

    # ---- streamed channel reduction: groups of <=8 sublanes at a time ------
    csum = None
    cmax = None
    c0 = 0
    while c0 < TC:                      # static Python loop, unrolled at trace
        g = min(8, TC - c0)
        xg = x_ref[0, pl.ds(c0, g), :].astype(jnp.float32)      # (g, HW)
        s = jnp.sum(xg, axis=0, keepdims=True)
        m = jnp.max(xg, axis=0, keepdims=True)
        csum = s if csum is None else csum + s
        cmax = m if cmax is None else jnp.maximum(cmax, m)
        c0 += g

    sum_ref[...] = sum_ref[...] + csum
    max_ref[...] = jnp.maximum(max_ref[...], cmax)

    # ---- finalize on the last chunk: 3x3 "same" conv + sigmoid -------------
    @pl.when(c_step == pl.num_programs(1) - 1)
    def _():
        avg = sum_ref[...] * (1.0 / float(C))                   # (1, HW)
        mx = max_ref[...]                                       # (1, HW)

        # Border-validity masks for the zero-padded conv, built once.
        col = lax.broadcasted_iota(jnp.int32, (1, HW), 1)
        w_idx = col % W
        h_ok = {-1: col >= W, 0: None, 1: col < (H - 1) * W}
        w_ok = {-1: w_idx >= 1, 0: None, 1: w_idx < (W - 1)}

        acc = jnp.zeros((1, HW), jnp.float32)
        for ic, fmap in ((0, avg), (1, mx)):
            for dh in (-1, 0, 1):
                for dw in (-1, 0, 1):
                    wgt = w_ref[ic * 9 + (dh + 1) * 3 + (dw + 1)]
                    # roll(x, s)[p] == x[(p - s) % HW]  =>  tap[p] = f[p + dh*W + dw]
                    shift = (-(dh * W + dw)) % HW
                    tap = pltpu.roll(fmap, shift, axis=1) if shift else fmap
                    if h_ok[dh] is not None and w_ok[dw] is not None:
                        mask = jnp.logical_and(h_ok[dh], w_ok[dw])
                    elif h_ok[dh] is not None:
                        mask = h_ok[dh]
                    else:
                        mask = w_ok[dw]
                    if mask is not None:
                        tap = jnp.where(mask, tap, 0.0)
                    acc = acc + wgt * tap

        o_ref[0] = jax.nn.sigmoid(acc).astype(o_ref.dtype)


def _pick_channel_tile(C, HW, itemsize, budget_bytes=4 << 20):
    """Channel chunk size: whole C if one input buffer fits the budget, else
    the largest multiple-of-8 divisor of C that does (block dims must be a
    multiple of 8 or the full extent)."""
    max_tc = max(8, budget_bytes // max(1, HW * itemsize))
    if C <= max_tc:
        return C
    tc = (max_tc // 8) * 8
    while tc >= 8:
        if C % tc == 0:
            return tc
        tc -= 8
    return C  # no clean divisor -> fall back to a single chunk


def spatial_attention(x, conv_weight):
    """x: (N, C, H, W) NCHW; conv_weight: (1, 2, 3, 3) OIHW. Returns (N, 1, H, W)."""
    N, C, H, W = x.shape
    HW = H * W
    itemsize = jnp.dtype(x.dtype).itemsize

    TC = _pick_channel_tile(C, HW, itemsize)
    assert C % TC == 0
    n_chunks = C // TC

    w_flat = conv_weight.reshape(-1).astype(jnp.float32)        # (18,)
    x_flat = x.reshape(N, C, HW)                                # lane-dense spatial

    # Explicit VMEM budget: double-buffered in/out blocks + f32 accumulators.
    vmem_needed = 2 * TC * HW * itemsize + 2 * HW * itemsize + 2 * HW * 4
    vmem_limit = int(min(32 << 20, max(16 << 20, 2 * vmem_needed)))

    kernel = functools.partial(_spatial_attention_kernel, C=C, H=H, W=W, TC=TC)
    out_flat = pl.pallas_call(
        kernel,
        out_shape=jax.ShapeDtypeStruct((N, 1, HW), x.dtype),
        grid=(N, n_chunks),
        in_specs=[
            pl.BlockSpec(memory_space=pltpu.MemorySpace.SMEM),      # conv weights
            pl.BlockSpec((1, TC, HW), lambda n, c: (n, c, 0)),      # x chunk
        ],
        out_specs=pl.BlockSpec((1, 1, HW), lambda n, c: (n, 0, 0)),
        scratch_shapes=[pltpu.VMEM((1, HW), jnp.float32),           # running sum
                        pltpu.VMEM((1, HW), jnp.float32)],          # running max
        compiler_params=pltpu.CompilerParams(
            dimension_semantics=("parallel", "arbitrary"),
            vmem_limit_bytes=vmem_limit),
    )(w_flat, x_flat)

    return out_flat.reshape(N, 1, H, W)


def _reference(x, w):
    """Pure-JAX reference matching the PyTorch forward."""
    avg = jnp.mean(x, axis=1, keepdims=True)
    mx = jnp.max(x, axis=1, keepdims=True)
    f = jnp.concatenate([avg, mx], axis=1)
    y = lax.conv_general_dilated(
        f, w, window_strides=(1, 1), padding=((1, 1), (1, 1)),
        dimension_numbers=("NCHW", "OIHW", "NCHW"))
    return jax.nn.sigmoid(y)


if __name__ == "__main__":
    key = jax.random.PRNGKey(0)
    kx, kw = jax.random.split(key)

    N, C, H, W = 2, 4, 16, 16
    x = jax.random.normal(kx, (N, C, H, W), dtype=jnp.float32)

    # Deterministic conv weight init (Conv2d(2, 1, 3, padding=1, bias=False)).
    fan_in = 2 * 3 * 3
    bound = 1.0 / (fan_in ** 0.5)
    conv_weight = jax.random.uniform(
        kw, (1, 2, 3, 3), dtype=jnp.float32, minval=-bound, maxval=bound)

    out = spatial_attention(x, conv_weight)
    out = jax.block_until_ready(out)

    ref = _reference(x, conv_weight)
    assert out.shape == (N, 1, H, W), out.shape
    assert jnp.allclose(out, ref, atol=1e-5, rtol=1e-5), (
        float(jnp.max(jnp.abs(out - ref))))

    print("KERNEL_OK")
</pallas_src>

<mosaic_0001>
module attributes {stable_mosaic.version = 11 : i64} {
  func.func @_spatial_attention_kernel(%arg0: i32, %arg1: i32, %arg2: memref<18xf32, #tpu.memory_space<smem>>, %arg3: memref<1x4x256xf32, #tpu.memory_space<vmem>>, %arg4: memref<1x1x256xf32, #tpu.memory_space<vmem>>, %arg5: memref<1x256xf32, #tpu.memory_space<vmem>>, %arg6: memref<1x256xf32, #tpu.memory_space<vmem>>) attributes {dimension_semantics = [#tpu.dimension_semantics<parallel>, #tpu.dimension_semantics<arbitrary>], iteration_bounds = array<i64: 2, 1>, scalar_prefetch = 0 : i64, scratch_operands = 2 : i64, tpu.core_type = #tpu.core_type<tc>, window_params = [{transform_indices = @transform_0, window_bounds = array<i64: 18>}, {transform_indices = @transform_1, window_bounds = array<i64: 1, 4, 256>}, {transform_indices = @transform_2, window_bounds = array<i64: 1, 1, 256>}]} {
    %c0_i32 = arith.constant 0 : i32
    %0 = arith.cmpi eq, %arg1, %c0_i32 : i32
    %1 = arith.extui %0 : i1 to i32
    %c0_i32_0 = arith.constant 0 : i32
    %2 = arith.cmpi ne, %1, %c0_i32_0 : i32
    scf.if %2 {
      %cst_14 = arith.constant 0.000000e+00 : f32
      %18 = vector.broadcast %cst_14 : f32 to vector<1x256xf32>
      %c0_15 = arith.constant 0 : index
      %c0_16 = arith.constant 0 : index
      %19 = vector.load %arg5[%c0_15, %c0_16] : memref<1x256xf32, #tpu.memory_space<vmem>>, vector<1x256xf32>
      tpu.vector_store %arg5[%c0_15, %c0_16], %18 {strides = array<i32>} : memref<1x256xf32, #tpu.memory_space<vmem>>, vector<1x256xf32>,
      %cst_17 = arith.constant 0xFF800000 : f32
      %20 = vector.broadcast %cst_17 : f32 to vector<1x256xf32>
      %c0_18 = arith.constant 0 : index
      %c0_19 = arith.constant 0 : index
      %21 = vector.load %arg6[%c0_18, %c0_19] : memref<1x256xf32, #tpu.memory_space<vmem>>, vector<1x256xf32>
      tpu.vector_store %arg6[%c0_18, %c0_19], %20 {strides = array<i32>} : memref<1x256xf32, #tpu.memory_space<vmem>>, vector<1x256xf32>,
    } else {
    }
    %c0 = arith.constant 0 : index
    %c0_1 = arith.constant 0 : index
    %c0_2 = arith.constant 0 : index
    %3 = vector.load %arg3[%c0, %c0_1, %c0_2] : memref<1x4x256xf32, #tpu.memory_space<vmem>>, vector<1x4x256xf32>
    %4 = vector.shape_cast %3 : vector<1x4x256xf32> to vector<4x256xf32>
    %cst = arith.constant dense<0.000000e+00> : vector<256xf32>
    %5 = vector.multi_reduction <add>, %4, %cst [0] : vector<4x256xf32> to vector<256xf32>
    %6 = vector.shape_cast %5 : vector<256xf32> to vector<1x256xf32>
    %cst_3 = arith.constant dense<0xFF800000> : vector<256xf32>
    %7 = vector.multi_reduction <maximumf>, %4, %cst_3 [0] : vector<4x256xf32> to vector<256xf32>
    %8 = vector.shape_cast %7 : vector<256xf32> to vector<1x256xf32>
    %c0_4 = arith.constant 0 : index
    %c0_5 = arith.constant 0 : index
    %9 = vector.load %arg5[%c0_4, %c0_5] : memref<1x256xf32, #tpu.memory_space<vmem>>, vector<1x256xf32>
    %10 = arith.addf %9, %6 : vector<1x256xf32>
    %c0_6 = arith.constant 0 : index
    %c0_7 = arith.constant 0 : index
    %11 = vector.load %arg5[%c0_6, %c0_7] : memref<1x256xf32, #tpu.memory_space<vmem>>, vector<1x256xf32>
    tpu.vector_store %arg5[%c0_6, %c0_7], %10 {strides = array<i32>} : memref<1x256xf32, #tpu.memory_space<vmem>>, vector<1x256xf32>,
    %c0_8 = arith.constant 0 : index
    %c0_9 = arith.constant 0 : index
    %12 = vector.load %arg6[%c0_8, %c0_9] : memref<1x256xf32, #tpu.memory_space<vmem>>, vector<1x256xf32>
    %13 = arith.maximumf %12, %8 : vector<1x256xf32>
    %c0_10 = arith.constant 0 : index
    %c0_11 = arith.constant 0 : index
    %14 = vector.load %arg6[%c0_10, %c0_11] : memref<1x256xf32, #tpu.memory_space<vmem>>, vector<1x256xf32>
    tpu.vector_store %arg6[%c0_10, %c0_11], %13 {strides = array<i32>} : memref<1x256xf32, #tpu.memory_space<vmem>>, vector<1x256xf32>,
    %c0_i32_12 = arith.constant 0 : i32
    %15 = arith.cmpi eq, %arg1, %c0_i32_12 : i32
    %16 = arith.extui %15 : i1 to i32
    %c0_i32_13 = arith.constant 0 : i32
    %17 = arith.cmpi ne, %16, %c0_i32_13 : i32
    scf.if %17 {
      %c0_14 = arith.constant 0 : index
      %c0_15 = arith.constant 0 : index
      %18 = vector.load %arg5[%c0_14, %c0_15] : memref<1x256xf32, #tpu.memory_space<vmem>>, vector<1x256xf32>
      %cst_16 = arith.constant 2.500000e-01 : f32
      %19 = vector.broadcast %cst_16 : f32 to vector<1x256xf32>
      %20 = arith.mulf %18, %19 : vector<1x256xf32>
      %c0_17 = arith.constant 0 : index
      %c0_18 = arith.constant 0 : index
      %21 = vector.load %arg6[%c0_17, %c0_18] : memref<1x256xf32, #tpu.memory_space<vmem>>, vector<1x256xf32>
      %22 = tpu.iota {dimensions = array<i32: 1>} : vector<1x256xi32>
      %c16_i32 = arith.constant 16 : i32
      %c0_i32_19 = arith.constant 0 : i32
      %23 = arith.cmpi eq, %c16_i32, %c0_i32_19 : i32
      %c1_i32 = arith.constant 1 : i32
      %24 = arith.select %23, %c1_i32, %c16_i32 : i32
      %25 = vector.broadcast %24 : i32 to vector<1x256xi32>
      %26 = arith.remsi %22, %25 : vector<1x256xi32>
      %c0_i32_20 = arith.constant 0 : i32
      %27 = vector.broadcast %c0_i32_20 : i32 to vector<1x256xi32>
      %28 = arith.cmpi ne, %26, %27 : vector<1x256xi32>
      %c0_i32_21 = arith.constant 0 : i32
      %29 = vector.broadcast %c0_i32_21 : i32 to vector<1x256xi32>
      %30 = arith.cmpi slt, %26, %29 : vector<1x256xi32>
      %c0_i32_22 = arith.constant 0 : i32
      %31 = arith.cmpi slt, %24, %c0_i32_22 : i32
      %32 = vector.broadcast %31 : i1 to vector<1x256xi1>
      %33 = vector.broadcast %32 : vector<1x256xi1> to vector<1x256xi1>
      %34 = arith.xori %30, %33 : vector<1x256xi1>
      %35 = arith.andi %34, %28 : vector<1x256xi1>
      %36 = vector.broadcast %24 : i32 to vector<1x256xi32>
      %37 = arith.addi %26, %36 : vector<1x256xi32>
      %38 = arith.select %35, %37, %26 : vector<1x256xi1>, vector<1x256xi32>
      %c16_i32_23 = arith.constant 16 : i32
      %39 = vector.broadcast %c16_i32_23 : i32 to vector<1x256xi32>
      %40 = arith.cmpi sge, %22, %39 : vector<1x256xi32>
      %c240_i32 = arith.constant 240 : i32
      %41 = vector.broadcast %c240_i32 : i32 to vector<1x256xi32>
      %42 = arith.cmpi slt, %22, %41 : vector<1x256xi32>
      %c1_i32_24 = arith.constant 1 : i32
      %43 = vector.broadcast %c1_i32_24 : i32 to vector<1x256xi32>
      %44 = arith.cmpi sge, %38, %43 : vector<1x256xi32>
      %c15_i32 = arith.constant 15 : i32
      %45 = vector.broadcast %c15_i32 : i32 to vector<1x256xi32>
      %46 = arith.cmpi slt, %38, %45 : vector<1x256xi32>
      %cst_25 = arith.constant 0.000000e+00 : f32
      %47 = vector.broadcast %cst_25 : f32 to vector<1x256xf32>
      %c0_26 = arith.constant 0 : index
      %48 = memref.load %arg2[%c0_26] : memref<18xf32, #tpu.memory_space<smem>>
      %c17_i32 = arith.constant 17 : i32
      %49 = tpu.dynamic_rotate %20 by %c17_i32 dim 1 : vector<1x256xf32>, i32 -> vector<1x256xf32>
      %50 = arith.andi %40, %44 : vector<1x256xi1>
      %cst_27 = arith.constant 0.000000e+00 : f32
      %51 = vector.broadcast %cst_27 : f32 to vector<1x256xf32>
      %52 = arith.select %50, %49, %51 : vector<1x256xi1>, vector<1x256xf32>
      %53 = vector.broadcast %48 : f32 to vector<1x256xf32>
      %54 = arith.mulf %53, %52 : vector<1x256xf32>
      %55 = arith.addf %47, %54 : vector<1x256xf32>
      %c1 = arith.constant 1 : index
      %56 = memref.load %arg2[%c1] : memref<18xf32, #tpu.memory_space<smem>>
      %c16_i32_28 = arith.constant 16 : i32
      %57 = tpu.dynamic_rotate %20 by %c16_i32_28 dim 1 : vector<1x256xf32>, i32 -> vector<1x256xf32>
      %cst_29 = arith.constant 0.000000e+00 : f32
      %58 = vector.broadcast %cst_29 : f32 to vector<1x256xf32>
      %59 = arith.select %40, %57, %58 : vector<1x256xi1>, vector<1x256xf32>
      %60 = vector.broadcast %56 : f32 to vector<1x256xf32>
      %61 = arith.mulf %60, %59 : vector<1x256xf32>
      %62 = arith.addf %55, %61 : vector<1x256xf32>
      %c2 = arith.constant 2 : index
      %63 = memref.load %arg2[%c2] : memref<18xf32, #tpu.memory_space<smem>>
      %c15_i32_30 = arith.constant 15 : i32
      %64 = tpu.dynamic_rotate %20 by %c15_i32_30 dim 1 : vector<1x256xf32>, i32 -> vector<1x256xf32>
      %65 = arith.andi %40, %46 : vector<1x256xi1>
      %cst_31 = arith.constant 0.000000e+00 : f32
      %66 = vector.broadcast %cst_31 : f32 to vector<1x256xf32>
      %67 = arith.select %65, %64, %66 : vector<1x256xi1>, vector<1x256xf32>
      %68 = vector.broadcast %63 : f32 to vector<1x256xf32>
      %69 = arith.mulf %68, %67 : vector<1x256xf32>
      %70 = arith.addf %62, %69 : vector<1x256xf32>
      %c3 = arith.constant 3 : index
      %71 = memref.load %arg2[%c3] : memref<18xf32, #tpu.memory_space<smem>>
      %c1_i32_32 = arith.constant 1 : i32
      %72 = tpu.dynamic_rotate %20 by %c1_i32_32 dim 1 : vector<1x256xf32>, i32 -> vector<1x256xf32>
      %cst_33 = arith.constant 0.000000e+00 : f32
      %73 = vector.broadcast %cst_33 : f32 to vector<1x256xf32>
      %74 = arith.select %44, %72, %73 : vector<1x256xi1>, vector<1x256xf32>
      %75 = vector.broadcast %71 : f32 to vector<1x256xf32>
      %76 = arith.mulf %75, %74 : vector<1x256xf32>
      %77 = arith.addf %70, %76 : vector<1x256xf32>
      %c4 = arith.constant 4 : index
      %78 = memref.load %arg2[%c4] : memref<18xf32, #tpu.memory_space<smem>>
      %79 = vector.broadcast %78 : f32 to vector<1x256xf32>
      %80 = arith.mulf %79, %20 : vector<1x256xf32>
      %81 = arith.addf %77, %80 : vector<1x256xf32>
      %c5 = arith.constant 5 : index
      %82 = memref.load %arg2[%c5] : memref<18xf32, #tpu.memory_space<smem>>
      %c255_i32 = arith.constant 255 : i32
      %83 = tpu.dynamic_rotate %20 by %c255_i32 dim 1 : vector<1x256xf32>, i32 -> vector<1x256xf32>
      %cst_34 = arith.constant 0.000000e+00 : f32
      %84 = vector.broadcast %cst_34 : f32 to vector<1x256xf32>
      %85 = arith.select %46, %83, %84 : vector<1x256xi1>, vector<1x256xf32>
      %86 = vector.broadcast %82 : f32 to vector<1x256xf32>
      %87 = arith.mulf %86, %85 : vector<1x256xf32>
      %88 = arith.addf %81, %87 : vector<1x256xf32>
      %c6 = arith.constant 6 : index
      %89 = memref.load %arg2[%c6] : memref<18xf32, #tpu.memory_space<smem>>
      %c241_i32 = arith.constant 241 : i32
      %90 = tpu.dynamic_rotate %20 by %c241_i32 dim 1 : vector<1x256xf32>, i32 -> vector<1x256xf32>
      %91 = arith.andi %42, %44 : vector<1x256xi1>
      %cst_35 = arith.constant 0.000000e+00 : f32
      %92 = vector.broadcast %cst_35 : f32 to vector<1x256xf32>
      %93 = arith.select %91, %90, %92 : vector<1x256xi1>, vector<1x256xf32>
      %94 = vector.broadcast %89 : f32 to vector<1x256xf32>
      %95 = arith.mulf %94, %93 : vector<1x256xf32>
      %96 = arith.addf %88, %95 : vector<1x256xf32>
      %c7 = arith.constant 7 : index
      %97 = memref.load %arg2[%c7] : memref<18xf32, #tpu.memory_space<smem>>
      %c240_i32_36 = arith.constant 240 : i32
      %98 = tpu.dynamic_rotate %20 by %c240_i32_36 dim 1 : vector<1x256xf32>, i32 -> vector<1x256xf32>
      %cst_37 = arith.constant 0.000000e+00 : f32
      %99 = vector.broadcast %cst_37 : f32 to vector<1x256xf32>
      %100 = arith.select %42, %98, %99 : vector<1x256xi1>, vector<1x256xf32>
      %101 = vector.broadcast %97 : f32 to vector<1x256xf32>
      %102 = arith.mulf %101, %100 : vector<1x256xf32>
      %103 = arith.addf %96, %102 : vector<1x256xf32>
      %c8 = arith.constant 8 : index
      %104 = memref.load %arg2[%c8] : memref<18xf32, #tpu.memory_space<smem>>
      %c239_i32 = arith.constant 239 : i32
      %105 = tpu.dynamic_rotate %20 by %c239_i32 dim 1 : vector<1x256xf32>, i32 -> vector<1x256xf32>
      %106 = arith.andi %42, %46 : vector<1x256xi1>
      %cst_38 = arith.constant 0.000000e+00 : f32
      %107 = vector.broadcast %cst_38 : f32 to vector<1x256xf32>
      %108 = arith.select %106, %105, %107 : vector<1x256xi1>, vector<1x256xf32>
      %109 = vector.broadcast %104 : f32 to vector<1x256xf32>
      %110 = arith.mulf %109, %108 : vector<1x256xf32>
      %111 = arith.addf %103, %110 : vector<1x256xf32>
      %c9 = arith.constant 9 : index
      %112 = memref.load %arg2[%c9] : memref<18xf32, #tpu.memory_space<smem>>
      %c17_i32_39 = arith.constant 17 : i32
      %113 = tpu.dynamic_rotate %21 by %c17_i32_39 dim 1 : vector<1x256xf32>, i32 -> vector<1x256xf32>
      %114 = arith.andi %40, %44 : vector<1x256xi1>
      %cst_40 = arith.constant 0.000000e+00 : f32
      %115 = vector.broadcast %cst_40 : f32 to vector<1x256xf32>
      %116 = arith.select %114, %113, %115 : vector<1x256xi1>, vector<1x256xf32>
      %117 = vector.broadcast %112 : f32 to vector<1x256xf32>
      %118 = arith.mulf %117, %116 : vector<1x256xf32>
      %119 = arith.addf %111, %118 : vector<1x256xf32>
      %c10 = arith.constant 10 : index
      %120 = memref.load %arg2[%c10] : memref<18xf32, #tpu.memory_space<smem>>
      %c16_i32_41 = arith.constant 16 : i32
      %121 = tpu.dynamic_rotate %21 by %c16_i32_41 dim 1 : vector<1x256xf32>, i32 -> vector<1x256xf32>
      %cst_42 = arith.constant 0.000000e+00 : f32
      %122 = vector.broadcast %cst_42 : f32 to vector<1x256xf32>
      %123 = arith.select %40, %121, %122 : vector<1x256xi1>, vector<1x256xf32>
      %124 = vector.broadcast %120 : f32 to vector<1x256xf32>
      %125 = arith.mulf %124, %123 : vector<1x256xf32>
      %126 = arith.addf %119, %125 : vector<1x256xf32>
      %c11 = arith.constant 11 : index
      %127 = memref.load %arg2[%c11] : memref<18xf32, #tpu.memory_space<smem>>
      %c15_i32_43 = arith.constant 15 : i32
      %128 = tpu.dynamic_rotate %21 by %c15_i32_43 dim 1 : vector<1x256xf32>, i32 -> vector<1x256xf32>
      %129 = arith.andi %40, %46 : vector<1x256xi1>
      %cst_44 = arith.constant 0.000000e+00 : f32
      %130 = vector.broadcast %cst_44 : f32 to vector<1x256xf32>
      %131 = arith.select %129, %128, %130 : vector<1x256xi1>, vector<1x256xf32>
      %132 = vector.broadcast %127 : f32 to vector<1x256xf32>
      %133 = arith.mulf %132, %131 : vector<1x256xf32>
      %134 = arith.addf %126, %133 : vector<1x256xf32>
      %c12 = arith.constant 12 : index
      %135 = memref.load %arg2[%c12] : memref<18xf32, #tpu.memory_space<smem>>
      %c1_i32_45 = arith.constant 1 : i32
      %136 = tpu.dynamic_rotate %21 by %c1_i32_45 dim 1 : vector<1x256xf32>, i32 -> vector<1x256xf32>
      %cst_46 = arith.constant 0.000000e+00 : f32
      %137 = vector.broadcast %cst_46 : f32 to vector<1x256xf32>
      %138 = arith.select %44, %136, %137 : vector<1x256xi1>, vector<1x256xf32>
      %139 = vector.broadcast %135 : f32 to vector<1x256xf32>
      %140 = arith.mulf %139, %138 : vector<1x256xf32>
      %141 = arith.addf %134, %140 : vector<1x256xf32>
      %c13 = arith.constant 13 : index
      %142 = memref.load %arg2[%c13] : memref<18xf32, #tpu.memory_space<smem>>
      %143 = vector.broadcast %142 : f32 to vector<1x256xf32>
      %144 = arith.mulf %143, %21 : vector<1x256xf32>
      %145 = arith.addf %141, %144 : vector<1x256xf32>
      %c14 = arith.constant 14 : index
      %146 = memref.load %arg2[%c14] : memref<18xf32, #tpu.memory_space<smem>>
      %c255_i32_47 = arith.constant 255 : i32
      %147 = tpu.dynamic_rotate %21 by %c255_i32_47 dim 1 : vector<1x256xf32>, i32 -> vector<1x256xf32>
      %cst_48 = arith.constant 0.000000e+00 : f32
      %148 = vector.broadcast %cst_48 : f32 to vector<1x256xf32>
      %149 = arith.select %46, %147, %148 : vector<1x256xi1>, vector<1x256xf32>
      %150 = vector.broadcast %146 : f32 to vector<1x256xf32>
      %151 = arith.mulf %150, %149 : vector<1x256xf32>
      %152 = arith.addf %145, %151 : vector<1x256xf32>
      %c15 = arith.constant 15 : index
      %153 = memref.load %arg2[%c15] : memref<18xf32, #tpu.memory_space<smem>>
      %c241_i32_49 = arith.constant 241 : i32
      %154 = tpu.dynamic_rotate %21 by %c241_i32_49 dim 1 : vector<1x256xf32>, i32 -> vector<1x256xf32>
      %155 = arith.andi %42, %44 : vector<1x256xi1>
      %cst_50 = arith.constant 0.000000e+00 : f32
      %156 = vector.broadcast %cst_50 : f32 to vector<1x256xf32>
      %157 = arith.select %155, %154, %156 : vector<1x256xi1>, vector<1x256xf32>
      %158 = vector.broadcast %153 : f32 to vector<1x256xf32>
      %159 = arith.mulf %158, %157 : vector<1x256xf32>
      %160 = arith.addf %152, %159 : vector<1x256xf32>
      %c16 = arith.constant 16 : index
      %161 = memref.load %arg2[%c16] : memref<18xf32, #tpu.memory_space<smem>>
      %c240_i32_51 = arith.constant 240 : i32
      %162 = tpu.dynamic_rotate %21 by %c240_i32_51 dim 1 : vector<1x256xf32>, i32 -> vector<1x256xf32>
      %cst_52 = arith.constant 0.000000e+00 : f32
      %163 = vector.broadcast %cst_52 : f32 to vector<1x256xf32>
      %164 = arith.select %42, %162, %163 : vector<1x256xi1>, vector<1x256xf32>
      %165 = vector.broadcast %161 : f32 to vector<1x256xf32>
      %166 = arith.mulf %165, %164 : vector<1x256xf32>
      %167 = arith.addf %160, %166 : vector<1x256xf32>
      %c17 = arith.constant 17 : index
      %168 = memref.load %arg2[%c17] : memref<18xf32, #tpu.memory_space<smem>>
      %c239_i32_53 = arith.constant 239 : i32
      %169 = tpu.dynamic_rotate %21 by %c239_i32_53 dim 1 : vector<1x256xf32>, i32 -> vector<1x256xf32>
      %170 = arith.andi %42, %46 : vector<1x256xi1>
      %cst_54 = arith.constant 0.000000e+00 : f32
      %171 = vector.broadcast %cst_54 : f32 to vector<1x256xf32>
      %172 = arith.select %170, %169, %171 : vector<1x256xi1>, vector<1x256xf32>
      %173 = vector.broadcast %168 : f32 to vector<1x256xf32>
      %174 = arith.mulf %173, %172 : vector<1x256xf32>
      %175 = arith.addf %167, %174 : vector<1x256xf32>
      %176 = arith.negf %175 : vector<1x256xf32>
      %177 = math.exp %176 : vector<1x256xf32>
      %cst_55 = arith.constant 1.000000e+00 : f32
      %178 = vector.broadcast %cst_55 : f32 to vector<1x256xf32>
      %179 = arith.addf %178, %177 : vector<1x256xf32>
      %180 = arith.divf %178, %179 : vector<1x256xf32>
      %c0_56 = arith.constant 0 : index
      %c0_57 = arith.constant 0 : index
      %c0_58 = arith.constant 0 : index
      %181 = vector.load %arg4[%c0_56, %c0_57, %c0_58] : memref<1x1x256xf32, #tpu.memory_space<vmem>>, vector<1x1x256xf32>
      %182 = vector.shape_cast %181 : vector<1x1x256xf32> to vector<1x256xf32>
      %183 = vector.shape_cast %180 : vector<1x256xf32> to vector<1x1x256xf32>
      tpu.vector_store %arg4[%c0_56, %c0_57, %c0_58], %183 {strides = array<i32>} : memref<1x1x256xf32, #tpu.memory_space<vmem>>, vector<1x1x256xf32>,
    } else {
    }
    return
  }
  func.func @transform_0(%arg0: i32, %arg1: i32) -> i32 {
    %c0_i32 = arith.constant 0 : i32
    %c0_i32_0 = arith.constant 0 : i32
    return %c0_i32 : i32
  }
  func.func @transform_1(%arg0: i32, %arg1: i32) -> (i32, i32, i32) {
    %c0_i32 = arith.constant 0 : i32
    %c0_i32_0 = arith.constant 0 : i32
    return %arg0, %arg1, %c0_i32 : i32, i32, i32
  }
  func.func @transform_2(%arg0: i32, %arg1: i32) -> (i32, i32, i32) {
    %c0_i32 = arith.constant 0 : i32
    %c0_i32_0 = arith.constant 0 : i32
    %c0_i32_1 = arith.constant 0 : i32
    return %arg0, %c0_i32, %c0_i32_0 : i32, i32, i32
  }
}

</mosaic_0001>

<bundles_post_ra>
// kernel: tpu_custom_call.1
= control target key start
LH: loop header
LB: loop body
LE: loop exit
PB: predicated region body
PF: predicated region fallthrough
CT: control target
= control target key end

     0   :  { %7 = vsyncpa [#allocation7], 0  ;;  %s1569_s0 = inlined_call_operand.hbm [shape: f32[18], index: 0, kind: input, shape index: {}]   ;;  %s1570_s1 = inlined_call_operand.hbm [shape: f32[2,4,256], index: 1, kind: input, shape index: {}]   ;;  %s1571_s2 = inlined_call_operand.hbm [shape: f32[2,1,256], index: 2, kind: output, shape index: {}]  }
   0x1   :  { %8 = vsyncpa [#allocation5], 0 }
   0x2   :  { %10 = vsyncpa [#allocation5 + $0x1], 0 }
   0x3   :  { %11 = vsyncpa [#allocation6], 0 }
   0x4   :  { %13 = vsyncpa [#allocation6 + $0x1], 0  ;;  %s1042_s9 = smov 0   ;;  %s1044_s10 = smov 0  }
   0x5   :  { %s1046_s11 = smov 0   ;;  %s1048_s12 = smov 0  }
   0x6   :  { %s1050_s13 = smov 0   ;;  %s1052_s14 = smov 0  }
   0x7 LB: > { %s751_s15 = sadd.s32 4294967295, %s1011_s14   ;;  %s752_s16 = sadd.s32 4294967294, %s1011_s14   ;;  %s1011_s14 = sphi %s1052_s14, %s19_s14   ;;  %s1007_s13 = sphi %s1050_s13, %s1619_s13   ;;  %s1003_s12 = sphi %s1048_s12, %s1618_s12   ;;  %s999_s11 = sphi %s1046_s11, %s1617_s11   ;;  %s995_s10 = sphi %s1044_s10, %s1616_s10   ;;  %s991_s9 = sphi %s1042_s9, %s1615_s9  }
   0x8   : > { %p74_p0 = scmp.ne.s32.totalorder %s995_s10, %s991_s9  ;;  %p1076_p1 = scmp.eq.s32.totalorder %s751_s15, 0 }
   0x9   : > { %p1080_p2 = scmp.eq.s32.totalorder %s751_s15, 1  ;;  %p104_p3 = scmp.eq.s32.totalorder %s752_s16, 1 }
   0xa   : > { %s1578_s17 = scalar_select %p1076_p1, 1, 0 }
   0xb   : > { %p1086_p4 = por %p1076_p1, %p74_p0  ;;  %p753_p5 = scmp.ge.s32.totalorder %s1011_s14, 1 }
   0xc   : > { %p1091_p6 = por %p104_p3, %p74_p0  ;;  %p111_p7 = scmp.lt.s32.totalorder %s1011_s14, 3 }
   0xd   : > { %s1580_s19 = scalar_select %p1086_p4, 1, 0 }
   0xe   : > { %s1581_s20 = scalar_select %p1091_p6, 1, 0 }
   0xf   : > { %p1096_p8 = pnand %p753_p5, %p111_p7  ;;  %s31_s22 = sadd.s32 1, %s1007_s13 }
  0x10   : > { %p1110_p12 = scmp.ge.s32.totalorder %s31_s22, 2  ;;  %s61_s25 = sadd.s32 1, %s999_s11 }
  0x11   : > { %p797_p10 = pneg %p1096_p8  ;;  %p68_p13 = scmp.ne.s32.totalorder %s999_s11, %s995_s10 }
  0x12   : > { %p69_p0 = scmp.eq.s32.totalorder %s1011_s14, 0  ;;  %s882_s28 = scalar_lea.hbm %s1569_s0, 16 }
  0x13   : > { %p1106_p11 = pnand %p797_p10, %p1076_p1  ;;  %p883_p3 = scmp.ne.s32.totalorder %s1569_s0, %s882_s28 }
  0x14   : > { %p889_p9 = scmp.lt.u32.totalorder %s882_s28, %s1569_s0 }
  0x15   : > { %p884_p5 = pneg %p1106_p11 }
  0x17   : > { %p885_p7 = pnand %p884_p5, %p883_p3 }
  0x19   : > { %p886_p10 = pneg %p885_p7 }
  0x1b   : > { %p891_p6 = pnand %p889_p9, %p886_p10 }
  0x1d   : > { %894 = shalt.err (!%p891_p6)
}
  0x1e   : > { %s1013_s5 = smov [#allocation4]   ;;  %s1621_s22 = smov (%p1110_p12, %s31_s22), 0 }
  0x1f   : > { %800 = dma.hbm_to_smem (!%p1106_p11), %s1569_s0, 16, %s1013_s5, [#allocation7]  }
  0x20   : > { %p1141_p6 = por %p69_p0, %p68_p13  ;;  %p1150_p9 = por %p1080_p2, %p68_p13 }
  0x21   : > { %s56_s16 = ssub.s32 %s1007_s13, %s1621_s22  ;;  %p810_p3 = scmp.lt.s32.totalorder %s1011_s14, 2 }
  0x22   : > { %s1586_s15 = scalar_select %p1150_p9, 1, 0 }
  0x23   : > { %p59_p5 = scmp.eq.s32.totalorder %s56_s16, 0  ;;  %s133_s23 = sand.u32 1, %s999_s11  }
  0x24   : > { %s756_s24 = sshll.u32 %s133_s23, 3  ;;  %s787_s27 = sshll.u32 %s1007_s13, 7 }
  0x25   : > { %s1159_s26 = scalar_select %p59_p5, %s999_s11, %s61_s25  }
  0x26   : > { %s1165_s30 = scalar_lea.hbm %s1570_s1, %s787_s27  ;;  %s137_s18 = scalar_lea.vmem [#allocation8], %s756_s24 }
  0x27   : > { %s147_s3 = sshll.u32 %s137_s18, 4  ;;  %p1171_p2 = pnand %p810_p3, %p1141_p6  ;;  %s1167_s3 = int_to_ptr.vmem [resolvable:$true] %s147_s3 }
  0x28   : > { %s134_s25 = scalar_lea.sflag [#allocation5], %s133_s23  ;;  %s895_s5 = scalar_lea.hbm %s1165_s30, 128 }
  0x29   : > { %p896_p11 = scmp.ne.s32.totalorder %s1165_s30, %s895_s5  ;;  %p897_p12 = pneg %p1171_p2 }
  0x2a   : > { %s900_s16 = scalar_lea.hbm %s1570_s1, 256  ;;  %p901_p7 = scmp.lt.u32.totalorder %s1165_s30, %s1570_s1 }
  0x2b   : > { %p898_p13 = pnand %p897_p12, %p896_p11  ;;  %p902_p10 = scmp.lt.u32.totalorder %s900_s16, %s895_s5 }
  0x2c   : > { %p904_p3 = scmp.lt.u32.totalorder %s895_s5, %s1165_s30 }
  0x2d   : > { %p899_p0 = pneg %p898_p13  ;;  %p903_p6 = por %p902_p10, %p901_p7 }
  0x2f   : > { %p905_p5 = por %p904_p3, %p903_p6 }
  0x31   : > { %p906_p9 = pnand %p905_p5, %p899_p0 }
  0x33   : > { %909 = shalt.err (!%p906_p9)
}
  0x34   : > { %s910_s23 = scalar_lea.vmem %s1167_s3, 128  ;;  %s1014_s27 = smov [#allocation8]  }
  0x35   : > { %p911_p11 = scmp.ne.s32.totalorder %s1167_s3, %s910_s23  ;;  %s915_s28 = sshll.u32 %s1014_s27, 4  ;;  %s916_s28 = int_to_ptr.vmem [resolvable:$false] %s915_s28 }
  0x36   : > { %s917_s29 = scalar_lea.vmem %s916_s28, 256  ;;  %p918_p1 = scmp.lt.s32.totalorder %s1167_s3, %s916_s28 }
  0x37   : > { %p913_p13 = pnand %p911_p11, %p897_p12  ;;  %p919_p7 = scmp.lt.s32.totalorder %s917_s29, %s910_s23 }
  0x39   : > { %p914_p4 = pneg %p913_p13  ;;  %p920_p10 = por %p919_p7, %p918_p1 }
  0x3b   : > { %p921_p6 = pnand %p920_p10, %p914_p4 }
  0x3d   : > { %924 = shalt.err (!%p921_p6)
}
  0x3e   : > { %804 = dma.hbm_to_vmem [thread:$0]  (!%p1171_p2), %s1165_s30, 128, %s1167_s3, %s134_s25  }
  0x3f   : > { %156 = sbr.rel (%p1096_p8) target bundleno = 339 (0x153), region = 28  ;;  %p1588_p9 = scmp.ne.s32.totalorder (!%p1096_p8), %s1578_s17, 0 }
  0x46   : > { %978 = dma.done.wait (%p1588_p9), [#allocation7], 16  }
  0x47   : > { %980 = vsyncadd (%p1588_p9), [#allocation7], 4294967280  ;;  %s1207_s18 = sand.u32 1, %s995_s10   ;;  %p1589_p1 = scmp.ne.s32.totalorder %s1580_s19, 0 }
  0x48   : > { %s761_s5 = sshll.u32 %s1207_s18, 3  ;;  %s163_s4 = scalar_lea.sflag [#allocation5], %s1207_s18 }
  0x49   : > { %s166_s6 = scalar_lea.vmem [#allocation8], %s761_s5 }
  0x4a   : > { %982 = dma.done.wait (%p1589_p1), %s163_s4, 128  }
  0x4b   : > { %984 = vsyncadd (%p1589_p1), %s163_s4, 4294967168 }
  0x4c   : > { %171 = sfence }
  0x4d   : > { %v192_v0 = vlaneseq  ;;  %v198_v1 = vld [vmem:[%s166_s6] sm:$0xff]  ;;  %vm202_vm0 = vcmask 1043456   ;;  %v1015_v8 = vmov -inf   ;;  %v1016_v11 = vmov 0.0   ;;  %s1018_s17 = smov 17   ;;  %s766_s19 = sld [smem:[#allocation4 + $0x4]] }
  0x4e   : > { %v200_v2 = vcombine.high %v198_v1, %v198_v1  ;;  %v203_v3 = vsel %vm202_vm0, %v198_v1, 0.0  ;;  %v217_v4 = vsel %vm202_vm0, %v198_v1, -inf  ;;  %v1017_v16 = vmov 1966171168   ;;  %s1019_s21 = smov 16   ;;  %s1020_s30 = smov 15  }
  0x4f   : > { %vm1216_vm1 = vcmp.lt.s32.totalorder %v192_v0, 256  ;;  %v204_v6 = vrot.slane %v203_v3, 4  ;;  %v218_v7 = vrot.slane %v217_v4, 4  ;;  %v236_v17 = vunpack.c.l.s4 %v1017_v16  ;;  %s1021_s3 = smov 1   ;;  %s1022_s25 = smov 127  }
  0x50   : > { %197 = vst.msk [vmem:[#allocation3] sm:$0x3] %vm1216_vm1, %v1015_v8  ;;  %v210_v9 = vsel %vm202_vm0, %v200_v2, 0.0  ;;  %v224_v10 = vsel %vm202_vm0, %v200_v2, -inf  ;;  %196 = vst.msk [vmem:[#allocation2] sm:$0x3] %vm1216_vm1, %v1016_v11 }
  0x51   : > { %v205_v12 = vadd.f32 %v204_v6, %v203_v3  ;;  %v211_v13 = vrot.slane %v210_v9, 4  ;;  %v219_v14 = vmax.f32 %v217_v4, %v218_v7  ;;  %v225_v15 = vrot.slane %v224_v10, 4  ;;  %s775_s7 = sld [smem:[#allocation4 + $0xd]]  ;;  %s1023_s16 = smov 113  }
  0x52   : > { %v237_v26 = vunpack.c.0.s8 %v236_v17  ;;  %v239_v27 = vshrl.u32 %v192_v0, 7  ;;  %s1024_s8 = smov 112   ;;  %s1025_s24 = smov 111   ;;  %v1256_v3 = vand.u32 127, %v192_v0 }
  0x53   : > { %v206_v18 = vrot.slane %v205_v12, 2  ;;  %v212_v19 = vadd.f32 %v211_v13, %v210_v9  ;;  %v220_v20 = vrot.slane %v219_v14, 2  ;;  %v226_v21 = vmax.f32 %v224_v10, %v225_v15  ;;  %s763_s23 = sld [smem:[#allocation4 + $0x1]]  ;;  %s1269_s27 = sld [smem:[#allocation4]] }
  0x54   : > { %v1225_v38 = vsub.s32 %v237_v26, %v239_v27  ;;  %v1235_v49 = vsub.s32 1, %v239_v27  ;;  %v1237_v50 = vsub.s32 0, %v239_v27  ;;  %v394_v58 = vstv %s766_s19  ;;  %s1273_s28 = sld [smem:[#allocation4 + $0x2]]  ;;  %s1291_s29 = sld [smem:[#allocation4 + $0x3]] }
  0x55   : > { %v207_v22 = vadd.f32 %v206_v18, %v205_v12  ;;  %v213_v23 = vrot.slane %v212_v19, 2  ;;  %v221_v24 = vmax.f32 %v219_v14, %v220_v20  ;;  %v227_v25 = vrot.slane %v226_v21, 2  ;;  %s1329_s5 = sld [smem:[#allocation4 + $0x5]]  ;;  %s1341_s4 = sld [smem:[#allocation4 + $0x6]] }
  0x56   : > { %v1263_v7 = vadd.s32 128, %v1256_v3  ;;  %v290_v10 = vand.u32 15, %v1256_v3  ;;  %vm310_vm2 = vcmp.ge.s32.totalorder %v1256_v3, 16  ;;  %vm334_vm5 = vcmp.lt.s32.totalorder %v1256_v3, 17  ;;  %s1352_s6 = sld [smem:[#allocation4 + $0x7]]  ;;  %s1382_s19 = sld [smem:[#allocation4 + $0x8]] }
  0x57   : > { %v208_v28 = vrot.slane %v207_v22, 1  ;;  %v214_v29 = vadd.f32 %v213_v23, %v212_v19  ;;  %v222_v30 = vrot.slane %v221_v24, 1  ;;  %v228_v31 = vmax.f32 %v226_v21, %v227_v25  ;;  %v256_v43 = vld [vmem:[#allocation3] sm:$0x3]  ;;  %v231_v44 = vld [vmem:[#allocation2] sm:$0x3] }
  0x58   : > { %v541_v62 = vstv %s775_s7  ;;  %v297_v0 = vand.u32 15, %v1263_v7  ;;  %vm1276_vm3 = vcmp.ge.s32.totalorder %v290_v10, 1  ;;  %vm351_vm6 = vcmp.lt.s32.totalorder %v1256_v3, 16  ;;  %s1460_s7 = sld [smem:[#allocation4 + $0xf]]  ;;  %p1612_p8 = scmp.ne.s32.totalorder %s1586_s15, 0 }
  0x59   : > { %v209_v32 = vadd.f32 %v208_v28, %v207_v22  ;;  %v215_v33 = vrot.slane %v214_v29, 1  ;;  %v223_v34 = vmax.f32 %v221_v24, %v222_v30  ;;  %v229_v35 = vrot.slane %v228_v31, 1  ;;  %vm1297_vm8 = vmand %vm310_vm2, %vm1276_vm3 }
  0x5a   : > { %vm1280_vm4 = vcmp.ge.s32.totalorder %v297_v0, 1  ;;  %v356_v15 = vstv %s763_s23  ;;  %v341_v17 = vstv %s1269_s27  ;;  %vm1287_vm7 = vcmp.lt.s32.totalorder %v290_v10, 15  ;;  %s788_s23 = sshll.u32 %s1003_s12, 5  ;;  %s644_s12 = scalar_lea.sflag [#allocation6], %s1207_s18 }
  0x5b   : > { %v216_v36 = vadd.f32 %v215_v33, %v214_v29  ;;  %v230_v37 = vmax.f32 %v228_v31, %v229_v35  ;;  %vm366_vm9 = vcmp.lt.s32.totalorder %v1256_v3, 15  ;;  %vm1316_vm10 = vcmp.lt.s32.totalorder %v297_v0, 15  ;;  %vm1324_vm11 = vmand %vm310_vm2, %vm1287_vm7 }
  0x5c   : > { %v373_v33 = vstv %s1273_s28  ;;  %vm383_vm12 = vcmp.lt.s32.totalorder %v1256_v3, 1  ;;  %vm1576_vm13 = vcmp.lt.s32.totalorder %v1256_v3, 127  ;;  %v419_v10 = vstv %s1329_s5 }
  0x5d   : > { %v234_v39 = vcombine.low %v209_v32, %v216_v36  ;;  %v259_v40 = vcombine.low %v223_v34, %v230_v37  ;;  %vm313_vm14 = vcmp.lt.s32.totalorder %v1263_v7, 240  ;;  %vm1577_vm15 = vcmp.lt.s32.totalorder %v1256_v3, 113 }
  0x5e   : > { %vm1377_vm0 = vmand %vm313_vm14, %vm1280_vm4 }
  0x5f   : > { %v241_v41 = vrot.slane %v234_v39, %v1225_v38  ;;  %v266_v42 = vrot.slane %v259_v40, %v1225_v38 }
  0x61   : > { %v248_v45 = vrot.slane %v241_v41, %v1225_v38  ;;  %v273_v46 = vrot.slane %v266_v42, %v1225_v38 }
  0x63   : > { %v275_v47 = vmax.f32 %v256_v43, %v273_v46  ;;  %v250_v48 = vadd.f32 %v248_v45, %v231_v44  ;;  %v388_v45 = vstv %s1291_s29 }
  0x65   : > { %276 = vst.msk [vmem:[#allocation3] sm:$0x3] %vm1216_vm1, %v275_v47  ;;  %255 = vst.msk [vmem:[#allocation2] sm:$0x3] %vm1216_vm1, %v250_v48 }
  0x6c   : > { %v282_v51 = vld [vmem:[#allocation3] sm:$0x3]  ;;  %v280_v52 = vld [vmem:[#allocation2] sm:$0x3] }
  0x6d   : > { %v482_v53 = vrot.slane %v282_v51, %v1235_v49  ;;  %v478_v54 = vrot.slane %v282_v51, %v1237_v50  ;;  %v281_v55 = vmul.f32 0.25, %v280_v52  ;;  %v1249_v63 = vmul.f32 %v541_v62, %v282_v51 }
  0x6f   : > { %487 = vrot.lane.b32.xlu1 %v482_v53, %s1018_s17  ;;  %485 = vrot.lane.b32.xlu0 %v478_v54, %s1018_s17  ;;  %v323_v56 = vrot.slane %v281_v55, %v1237_v50  ;;  %v327_v57 = vrot.slane %v281_v55, %v1235_v49  ;;  %v1243_v59 = vmul.f32 %v394_v58, %v281_v55 }
  0x70   : > { %v547_v1 = vrot.slane %v1249_v63, %v1237_v50  ;;  %v551_v2 = vrot.slane %v1249_v63, %v1235_v49 }
  0x71   : > { %v400_v60 = vrot.slane %v1243_v59, %v1237_v50  ;;  %v404_v61 = vrot.slane %v1243_v59, %v1235_v49 }
  0x73   : > { %501 = vrot.lane.b32.xlu1 %v482_v53, %s1019_s21  ;;  %499 = vrot.lane.b32.xlu0 %v478_v54, %s1019_s21 }
  0x77   : > { %347 = vrot.lane.b32.xlu1 %v323_v56, %s1019_s21  ;;  %330 = vrot.lane.b32.xlu0 %v323_v56, %s1018_s17 }
  0x7b   : > { %349 = vrot.lane.b32.xlu1 %v327_v57, %s1019_s21  ;;  %332 = vrot.lane.b32.xlu0 %v327_v57, %s1018_s17  ;;  %s1365_s17 = sld [smem:[#allocation4 + $0x9]]  ;;  %s1393_s21 = sld [smem:[#allocation4 + $0xa]] }
  0x7f   : > { %364 = vrot.lane.b32.xlu1 %v327_v57, %s1020_s30  ;;  %362 = vrot.lane.b32.xlu0 %v323_v56, %s1020_s30 }
  0x83   : > { %381 = vrot.lane.b32.xlu1 %v327_v57, %s1021_s3  ;;  %379 = vrot.lane.b32.xlu0 %v323_v56, %s1021_s3 }
  0x87   : > { %412 = vrot.lane.b32.xlu1 %v327_v57, %s1022_s25  ;;  %410 = vrot.lane.b32.xlu0 %v323_v56, %s1022_s25 }
  0x8b   : > { %427 = vrot.lane.b32.xlu1 %v327_v57, %s1023_s16  ;;  %425 = vrot.lane.b32.xlu0 %v323_v56, %s1023_s16 }
  0x8f   : > { %444 = vrot.lane.b32.xlu1 %v327_v57, %s1024_s8  ;;  %442 = vrot.lane.b32.xlu0 %v323_v56, %s1024_s8 }
  0x93   : > { %459 = vrot.lane.b32.xlu1 %v327_v57, %s1025_s24  ;;  %457 = vrot.lane.b32.xlu0 %v323_v56, %s1025_s24 }
  0x97   : > { %515 = vrot.lane.b32.xlu1 %v482_v53, %s1020_s30  ;;  %513 = vrot.lane.b32.xlu0 %v478_v54, %s1020_s30  ;;  %s1396_s30 = sld [smem:[#allocation4 + $0xb]] }
  0x9b   : > { %529 = vrot.lane.b32.xlu1 %v482_v53, %s1021_s3  ;;  %527 = vrot.lane.b32.xlu0 %v478_v54, %s1021_s3  ;;  %s1427_s3 = sld [smem:[#allocation4 + $0xc]] }
  0x9f   : > { %559 = vrot.lane.b32.xlu1 %v482_v53, %s1022_s25  ;;  %557 = vrot.lane.b32.xlu0 %v478_v54, %s1022_s25  ;;  %s1449_s25 = sld [smem:[#allocation4 + $0xe]] }
  0xa3   : > { %573 = vrot.lane.b32.xlu1 %v482_v53, %s1023_s16  ;;  %571 = vrot.lane.b32.xlu0 %v478_v54, %s1023_s16  ;;  %s1470_s16 = sld [smem:[#allocation4 + $0x10]] }
  0xa7   : > { %587 = vrot.lane.b32.xlu1 %v482_v53, %s1024_s8  ;;  %585 = vrot.lane.b32.xlu0 %v478_v54, %s1024_s8  ;;  %s779_s8 = sld [smem:[#allocation4 + $0x11]] }
  0xab   : > { %601 = vrot.lane.b32.xlu1 %v482_v53, %s1025_s24  ;;  %599 = vrot.lane.b32.xlu0 %v478_v54, %s1025_s24  ;;  %s762_s24 = sshll.u32 %s1207_s18, 1 }
  0xac   : > { %s187_s27 = scalar_lea.vmem [#allocation9], %s762_s24 }
  0xad   : > { %s658_s28 = sshll.u32 %s187_s27, 4  ;;  %s1520_s28 = int_to_ptr.vmem [resolvable:$true] %s658_s28 }
  0xe1   : > { %v1258_v4 = vpop.permute.xlu1 %487  ;;  %v1260_v6 = vpop.permute.xlu0 %485 }
  0xe5   : > { %v1265_v8 = vpop.permute.xlu1 %501  ;;  %v1267_v9 = vpop.permute.xlu0 %499 }
  0xe9   : > { %v348_v11 = vpop.permute.xlu1 %347  ;;  %v331_v12 = vpop.permute.xlu0 %330 }
  0xed   : > { %v350_v16 = vpop.permute.xlu1 %349  ;;  %v333_v18 = vpop.permute.xlu0 %332 }
  0xee   : > { %v352_v21 = vsel %vm351_vm6, %v348_v11, %v350_v16  ;;  %v353_v22 = vsel %vm351_vm6, %v350_v16, %v348_v11  ;;  %v335_v23 = vsel %vm334_vm5, %v331_v12, %v333_v18  ;;  %v336_v24 = vsel %vm334_vm5, %v333_v18, %v331_v12 }
  0xef   : > { %v354_v25 = vsel %vm310_vm2, %v353_v22, 0.0  ;;  %v339_v26 = vsel %vm1297_vm8, %v336_v24, 0.0  ;;  %v340_v27 = vsel %vm1280_vm4, %v335_v23, 0.0  ;;  %v358_v31 = vmul.f32 %v356_v15, %v352_v21 }
  0xf0   : > { %v357_v30 = vmul.f32 %v356_v15, %v354_v25  ;;  %v342_v35 = vmul.f32 %v341_v17, %v339_v26  ;;  %v343_v36 = vmul.f32 %v341_v17, %v340_v27  ;;  %v436_v27 = vstv %s1341_s4  ;;  %s1518_s4 = scalar_lea.hbm %s1571_s2, %s788_s23 }
  0xf1   : > { %v365_v32 = vpop.permute.xlu1 %364  ;;  %v363_v34 = vpop.permute.xlu0 %362 }
  0xf2   : > { %v367_v37 = vsel %vm366_vm9, %v363_v34, %v365_v32  ;;  %v368_v39 = vsel %vm366_vm9, %v365_v32, %v363_v34  ;;  %v359_v47 = vadd.f32 %v357_v30, %v342_v35  ;;  %v360_v48 = vadd.f32 %v358_v31, %v343_v36 }
  0xf3   : > { %v371_v40 = vsel %vm1324_vm11, %v368_v39, 0.0  ;;  %v372_v41 = vsel %vm1316_vm10, %v367_v37, 0.0  ;;  %v451_v36 = vstv %s1352_s6  ;;  %v489_v37 = vsel %vm334_vm5, %v1260_v6, %v1258_v4  ;;  %s925_s6 = scalar_lea.vmem %s1520_s28, 32 }
  0xf4   : > { %v374_v42 = vmul.f32 %v373_v33, %v371_v40  ;;  %v375_v43 = vmul.f32 %v373_v33, %v372_v41  ;;  %v490_v39 = vsel %vm334_vm5, %v1258_v4, %v1260_v6  ;;  %vm1418_vm5 = vmand %vm313_vm14, %vm1316_vm10  ;;  %p926_p4 = scmp.ne.s32.totalorder %s1520_s28, %s925_s6 }
  0xf5   : > { %v382_v44 = vpop.permute.xlu1 %381  ;;  %v380_v46 = vpop.permute.xlu0 %379 }
  0xf6   : > { %v384_v51 = vsel %vm383_vm12, %v380_v46, %v382_v44  ;;  %v385_v52 = vsel %vm383_vm12, %v382_v44, %v380_v46  ;;  %v376_v55 = vadd.f32 %v374_v42, %v359_v47  ;;  %v377_v56 = vadd.f32 %v375_v43, %v360_v48  ;;  %p927_p2 = pnand %p926_p4, %p1612_p8 }
  0xf7   : > { %v386_v53 = vsel %vm1276_vm3, %v385_v52, 0.0  ;;  %v387_v54 = vsel %vm1280_vm4, %v384_v51, 0.0  ;;  %v493_v48 = vstv %s1365_s17  ;;  %v491_v51 = vsel %vm1297_vm8, %v490_v39, 0.0  ;;  %s1026_s17 = smov [#allocation9]  }
  0xf8   : > { %v389_v57 = vmul.f32 %v388_v45, %v386_v53  ;;  %v390_v58 = vmul.f32 %v388_v45, %v387_v54  ;;  %v492_v52 = vsel %vm1280_vm4, %v489_v37, 0.0  ;;  %p928_p12 = pneg %p927_p2 }
  0xf9   : > { %v413_v62 = vpop.permute.xlu1 %412  ;;  %v411_v0 = vpop.permute.xlu0 %410 }
  0xfa   : > { %v391_v11 = vadd.f32 %v389_v57, %v376_v55  ;;  %v392_v12 = vadd.f32 %v390_v58, %v377_v56  ;;  %v415_v15 = vsel %vm1576_vm13, %v411_v0, %v413_v62  ;;  %v416_v16 = vsel %vm1576_vm13, %v413_v62, %v411_v0 }
  0xfb   : > { %v417_v17 = vsel %vm1287_vm7, %v415_v15, 0.0  ;;  %v418_v18 = vsel %vm1316_vm10, %v416_v16, 0.0  ;;  %vm446_vm13 = vcmp.lt.s32.totalorder %v1256_v3, 112  ;;  %v468_v55 = vstv %s1382_s19  ;;  %s929_s19 = sshll.u32 %s1026_s17, 4  ;;  %s930_s19 = int_to_ptr.vmem [resolvable:$false] %s929_s19 }
  0xfc   : > { %v407_v21 = vadd.f32 %v400_v60, %v391_v11  ;;  %v408_v22 = vadd.f32 %v404_v61, %v392_v12  ;;  %v420_v23 = vmul.f32 %v419_v10, %v417_v17  ;;  %v421_v24 = vmul.f32 %v419_v10, %v418_v18  ;;  %p932_p0 = scmp.lt.s32.totalorder %s1520_s28, %s930_s19 }
  0xfd   : > { %v428_v26 = vpop.permute.xlu1 %427  ;;  %v426_v30 = vpop.permute.xlu0 %425  ;;  %v504_v57 = vsel %vm351_vm6, %v1265_v8, %v1267_v9  ;;  %v507_v11 = vstv %s1393_s21  ;;  %v521_v16 = vstv %s1396_s30  ;;  %v494_v17 = vmul.f32 %v493_v48, %v491_v51  ;;  %s931_s21 = scalar_lea.vmem %s930_s19, 64 }
  0xfe   : > { %v422_v60 = vadd.f32 %v420_v23, %v407_v21  ;;  %v423_v31 = vadd.f32 %v421_v24, %v408_v22  ;;  %v430_v59 = vsel %vm1577_vm15, %v426_v30, %v428_v26  ;;  %v431_v61 = vsel %vm1577_vm15, %v428_v26, %v426_v30  ;;  %p933_p3 = scmp.lt.s32.totalorder %s931_s21, %s925_s6 }
  0xff   : > { %v434_v32 = vsel %vm1276_vm3, %v430_v59, 0.0  ;;  %v435_v33 = vsel %vm1377_vm0, %v431_v61, 0.0  ;;  %vm461_vm15 = vcmp.lt.s32.totalorder %v1256_v3, 111  ;;  %v495_v18 = vmul.f32 %v493_v48, %v492_v52 }
 0x100   : > { %v437_v34 = vmul.f32 %v436_v27, %v434_v32  ;;  %v438_v35 = vmul.f32 %v436_v27, %v435_v33  ;;  %v503_v21 = vsel %vm351_vm6, %v1267_v9, %v1265_v8  ;;  %v505_v22 = vsel %vm310_vm2, %v504_v57, 0.0  ;;  %p934_p5 = por %p933_p3, %p932_p0 }
 0x101   : > { %v445_v40 = vpop.permute.xlu1 %444  ;;  %v443_v41 = vpop.permute.xlu0 %442  ;;  %v508_v9 = vmul.f32 %v507_v11, %v505_v22  ;;  %v509_v59 = vmul.f32 %v507_v11, %v503_v21  ;;  %vm1608_vm2 = vcmp.lt.s32.totalorder %v1256_v3, 127 }
 0x102   : > { %v439_v42 = vadd.f32 %v437_v34, %v422_v60  ;;  %v440_v43 = vadd.f32 %v438_v35, %v423_v31  ;;  %v447_v44 = vsel %vm446_vm13, %v443_v41, %v445_v40  ;;  %v448_v45 = vsel %vm446_vm13, %v445_v40, %v443_v41  ;;  %vm1609_vm6 = vmmov %vm1608_vm2  ;;  %p935_p11 = pnand %p934_p5, %p928_p12 }
 0x103   : > { %v450_v46 = vsel %vm313_vm14, %v448_v45, 0.0  ;;  %v452_v47 = vmul.f32 %v451_v36, %v447_v44 }
 0x104   : > { %v453_v4 = vmul.f32 %v451_v36, %v450_v46  ;;  %v535_v36 = vstv %s1427_s3 }
 0x105   : > { %v454_v53 = vadd.f32 %v452_v47, %v439_v42  ;;  %v460_v54 = vpop.permute.xlu1 %459  ;;  %v458_v56 = vpop.permute.xlu0 %457 }
 0x106   : > { %v455_v58 = vadd.f32 %v453_v4, %v440_v43  ;;  %v462_v20 = vsel %vm461_vm15, %v458_v56, %v460_v54  ;;  %v463_v62 = vsel %vm461_vm15, %v460_v54, %v458_v56  ;;  %v565_v4 = vstv %s1449_s25 }
 0x107   : > { %v466_v10 = vsel %vm1287_vm7, %v462_v20, 0.0  ;;  %v467_v0 = vsel %vm1418_vm5, %v463_v62, 0.0 }
 0x108   : > { %v469_v12 = vmul.f32 %v468_v55, %v466_v10  ;;  %v470_v15 = vmul.f32 %v468_v55, %v467_v0  ;;  %v579_v0 = vstv %s1460_s7 }
 0x109   : > { %v516_v23 = vpop.permute.xlu1 %515  ;;  %v514_v24 = vpop.permute.xlu0 %513 }
 0x10a   : > { %v471_v26 = vadd.f32 %v469_v12, %v454_v53  ;;  %v472_v27 = vadd.f32 %v470_v15, %v455_v58  ;;  %v517_v30 = vsel %vm366_vm9, %v514_v24, %v516_v23  ;;  %v518_v60 = vsel %vm366_vm9, %v516_v23, %v514_v24 }
 0x10b   : > { %v519_v31 = vsel %vm1324_vm11, %v518_v60, 0.0  ;;  %v520_v8 = vsel %vm1316_vm10, %v517_v30, 0.0  ;;  %v607_v60 = vstv %s779_s8 }
 0x10c   : > { %v496_v61 = vadd.f32 %v494_v17, %v471_v26  ;;  %v497_v32 = vadd.f32 %v495_v18, %v472_v27  ;;  %v522_v33 = vmul.f32 %v521_v16, %v519_v31  ;;  %v523_v34 = vmul.f32 %v521_v16, %v520_v8 }
 0x10d   : > { %v530_v35 = vpop.permute.xlu1 %529  ;;  %v528_v37 = vpop.permute.xlu0 %527  ;;  %v593_v16 = vstv %s1470_s16 }
 0x10e   : > { %v510_v39 = vadd.f32 %v508_v9, %v496_v61  ;;  %v511_v40 = vadd.f32 %v509_v59, %v497_v32  ;;  %v531_v29 = vsel %vm383_vm12, %v528_v37, %v530_v35  ;;  %v532_v41 = vsel %vm383_vm12, %v530_v35, %v528_v37 }
 0x10f   : > { %v533_v42 = vsel %vm1276_vm3, %v532_v41, 0.0  ;;  %v534_v43 = vsel %vm1280_vm4, %v531_v29, 0.0  ;;  %vm1610_vm4 = vcmp.lt.s32.totalorder %v1256_v3, 113 }
 0x110   : > { %v524_v44 = vadd.f32 %v522_v33, %v510_v39  ;;  %v525_v45 = vadd.f32 %v523_v34, %v511_v40  ;;  %v536_v46 = vmul.f32 %v535_v36, %v533_v42  ;;  %v537_v47 = vmul.f32 %v535_v36, %v534_v43  ;;  %vm1611_vm8 = vmmov %vm1610_vm4 }
 0x111   : > { %v560_v48 = vpop.permute.xlu1 %559  ;;  %v558_v51 = vpop.permute.xlu0 %557 }
 0x112   : > { %v538_v52 = vadd.f32 %v536_v46, %v524_v44  ;;  %v539_v53 = vadd.f32 %v537_v47, %v525_v45  ;;  %v561_v54 = vsel %vm1608_vm2, %v558_v51, %v560_v48  ;;  %v562_v55 = vsel %vm1609_vm6, %v560_v48, %v558_v51 }
 0x113   : > { %v563_v14 = vsel %vm1287_vm7, %v561_v54, 0.0  ;;  %v564_v56 = vsel %vm1316_vm10, %v562_v55, 0.0 }
 0x114   : > { %v554_v57 = vadd.f32 %v547_v1, %v538_v52  ;;  %v555_v58 = vadd.f32 %v551_v2, %v539_v53  ;;  %v566_v20 = vmul.f32 %v565_v4, %v563_v14  ;;  %v567_v62 = vmul.f32 %v565_v4, %v564_v56 }
 0x115   : > { %v574_v10 = vpop.permute.xlu1 %573  ;;  %v572_v11 = vpop.permute.xlu0 %571 }
 0x116   : > { %v568_v12 = vadd.f32 %v566_v20, %v554_v57  ;;  %v569_v15 = vadd.f32 %v567_v62, %v555_v58  ;;  %v575_v28 = vsel %vm1610_vm4, %v572_v11, %v574_v10  ;;  %v576_v50 = vsel %vm1611_vm8, %v574_v10, %v572_v11 }
 0x117   : > { %v577_v1 = vsel %vm1276_vm3, %v575_v28, 0.0  ;;  %v578_v49 = vsel %vm1377_vm0, %v576_v50, 0.0 }
 0x118   : > { %v580_v63 = vmul.f32 %v579_v0, %v577_v1  ;;  %v581_v2 = vmul.f32 %v579_v0, %v578_v49 }
 0x119   : > { %v588_v17 = vpop.permute.xlu1 %587  ;;  %v586_v18 = vpop.permute.xlu0 %585 }
 0x11a   : > { %v582_v21 = vadd.f32 %v580_v63, %v568_v12  ;;  %v583_v22 = vadd.f32 %v581_v2, %v569_v15  ;;  %v589_v23 = vsel %vm446_vm13, %v586_v18, %v588_v17  ;;  %v590_v24 = vsel %vm446_vm13, %v588_v17, %v586_v18 }
 0x11b   : > { %v592_v13 = vsel %vm313_vm14, %v590_v24, 0.0  ;;  %v594_v26 = vmul.f32 %v593_v16, %v589_v23 }
 0x11c   : > { %v595_v27 = vmul.f32 %v593_v16, %v592_v13 }
 0x11d   : > { %v596_v25 = vadd.f32 %v594_v26, %v582_v21  ;;  %v602_v30 = vpop.permute.xlu1 %601  ;;  %v600_v31 = vpop.permute.xlu0 %599 }
 0x11e   : > { %v597_v8 = vadd.f32 %v595_v27, %v583_v22  ;;  %v603_v9 = vsel %vm461_vm15, %v600_v31, %v602_v30  ;;  %v604_v59 = vsel %vm461_vm15, %v602_v30, %v600_v31 }
 0x11f   : > { %v605_v61 = vsel %vm1287_vm7, %v603_v9, 0.0  ;;  %v606_v7 = vsel %vm1418_vm5, %v604_v59, 0.0 }
 0x120   : > { %v608_v32 = vmul.f32 %v607_v60, %v605_v61  ;;  %v609_v33 = vmul.f32 %v607_v60, %v606_v7 }
 0x122   : > { %v610_v34 = vadd.f32 %v608_v32, %v596_v25  ;;  %v611_v35 = vadd.f32 %v609_v33, %v597_v8 }
 0x124   : > { %v780_v36 = vmul.f32 -1.442695, %v610_v34  ;;  %v781_v37 = vmul.f32 -1.442695, %v611_v35 }
 0x126   : > { %874 = vpow2.f32 %v780_v36 }
 0x127   : > { %876 = vpow2.f32 %v781_v37 }
 0x130   : > { %v875_v39 = vpop.eup %874 }
 0x131   : > { %v877_v40 = vpop.eup %876  ;;  %v618_v3 = vadd.f32 1.0, %v875_v39 }
 0x132   : > { %v619_v29 = vadd.f32 1.0, %v877_v40 }
 0x133   : > { %878 = vrcp.f32 %v618_v3 }
 0x134   : > { %880 = vrcp.f32 %v619_v29 }
 0x13d   : > { %v879_v19 = vpop.eup %878 }
 0x13e   : > { %v881_v6 = vpop.eup %880 }
 0x13f   : > { %v626_v41 = vcombine.low %v879_v19, %v881_v6 }
 0x141   : > { %v633_v42 = vrot.slane %v626_v41, %v1225_v38 }
 0x143   : > { %v640_v43 = vrot.slane %v633_v42, %v1225_v38 }
 0x145   : > { %642 = vst.msk [vmem:[%s187_s27] sm:$0x3] %vm1216_vm1, %v640_v43 }
 0x146   : > { %938 = shalt.err (!%p935_p11)
}
 0x147   : > { %s939_s18 = scalar_lea.hbm %s1518_s4, 32  ;;  %s943_s25 = scalar_lea.hbm %s1571_s2, 64 }
 0x148   : > { %p940_p13 = scmp.ne.s32.totalorder %s1518_s4, %s939_s18  ;;  %p944_p6 = scmp.lt.u32.totalorder %s1518_s4, %s1571_s2 }
 0x149   : > { %p945_p9 = scmp.lt.u32.totalorder %s943_s25, %s939_s18  ;;  %p947_p4 = scmp.lt.u32.totalorder %s939_s18, %s1518_s4 }
 0x14a   : > { %p941_p7 = pnand %p940_p13, %p1612_p8 }
 0x14b   : > { %p946_p1 = por %p945_p9, %p944_p6 }
 0x14c   : > { %p942_p10 = pneg %p941_p7 }
 0x14d   : > { %p948_p2 = por %p947_p4, %p946_p1 }
 0x14f   : > { %p949_p12 = pnand %p948_p2, %p942_p10 }
 0x151   : > { %952 = shalt.err (!%p949_p12)
}
 0x152   : > { %795 = dma.vmem_to_hbm [thread:$0]  (%p1612_p8), %s1520_s28, 32, %s1518_s4, %s644_s12  }
 0x153 PF: > { %s670_s8 = sand.u32 1, %s991_s9   ;;  %p1613_p0 = scmp.ne.s32.totalorder %s1581_s20, 0 }
 0x154   : > { %p1614_p3 = scmp.ge.s32.totalorder %s1011_s14, 2  ;;  %s671_s24 = scalar_lea.sflag [#allocation6], %s670_s8 }
 0x156   : > { %p806_p5 = pnand %p1614_p3, %p1613_p0 }
 0x158   : > { %986 = dma.done.wait (!%p806_p5), %s671_s24, 32  }
 0x159   : > { %988 = vsyncadd (!%p806_p5), %s671_s24, 4294967264  ;;  %s19_s14 = sadd.s32 1, %s1011_s14   ;;  %s1615_s9 = smov %s995_s10 }
 0x15a   : > { %p16_p11 = scmp.ge.s32.totalorder %s19_s14, 4   ;;  %s1616_s10 = smov %s999_s11 }
 0x15b   : > { %s1617_s11 = smov %s1159_s26  ;;  %s1618_s12 = smov %s1007_s13 }
 0x15c   : > { %s1619_s13 = smov %s1621_s22  ;;  %18 = sbr.rel (!%p16_p11) target bundleno = 7 (0x7), region = 86 }
 0x163   :  { %676 = vsyncpa [#allocation5], 1 }
 0x164   :  { %678 = vsyncpa [#allocation5 + $0x1], 1 }
 0x165   :  { %679 = vsyncpa [#allocation6], 1 }
 0x166   :  { %681 = vsyncpa [#allocation6 + $0x1], 1 }
 0x167   :  { %682 = vsyncpa [#allocation7], 1 }
 0x168   :  { %684 = vsyncpa [#allocation7 + $0x1], 1 }

</bundles_post_ra>
